<compile_context>
chip_gen: v6e
topology: v6e:2x2x1
jax: 0.10.0
libtpu: 0.0.40
codegen_flags: <defaults>
</compile_context>

<pallas_src>
import jax
import jax.numpy as jnp
from jax.experimental import pallas as pl
from jax.experimental.pallas import tpu as pltpu


def _siamese_kernel(x1_ref, x2_ref, wt_ref, b_ref, out_ref):
    """One grid step == `block_b` batch elements.

    x1_ref, x2_ref : (Bblk, N, N*F)  VMEM, f32
    wt_ref         : (N*F, D)        VMEM, bf16 (weight tiled over neighbors)
    b_ref          : (1, D)          VMEM, f32
    out_ref        : (Bblk, N, N)    VMEM, f32
    """
    x1 = x1_ref[...].astype(jnp.bfloat16)
    x2 = x2_ref[...].astype(jnp.bfloat16)
    wt = wt_ref[...]                       # bf16
    b = b_ref[...]                         # f32 (1, D)

    # Fused node embedder: neighbor-sum folded into the projection matmul
    # (K = N*F, lane-dense), f32 accumulation on the MXU.
    h1 = jax.lax.dot_general(x1, wt, (((2,), (0,)), ((), ())),
                             preferred_element_type=jnp.float32)   # (Bblk, N, D)
    h2 = jax.lax.dot_general(x2, wt, (((2,), (0,)), ((), ())),
                             preferred_element_type=jnp.float32)   # (Bblk, N, D)
    e1 = jnp.maximum(h1 + b, 0.0)          # bias + ReLU in f32 (VPU, v5e-safe)
    e2 = jnp.maximum(h2 + b, 0.0)

    # Siamese head: scores[b, i, j] = sum_d e1[b, i, d] * e2[b, j, d]
    # Transpose expressed as a contraction-dim choice (no explicit .T).
    scores = jax.lax.dot_general(
        e1.astype(jnp.bfloat16), e2.astype(jnp.bfloat16),
        (((2,), (2,)), ((0,), (0,))),
        preferred_element_type=jnp.float32)                        # (Bblk, N, N)
    out_ref[...] = scores.astype(out_ref.dtype)


def _pick_block_b(bs, N, NF, D, vmem_budget_bytes=24 * 1024 * 1024):
    """Largest batch tile that divides bs and fits (double-buffered) in VMEM."""
    for cand in (16, 8, 4, 2, 1):
        if bs % cand != 0:
            continue
        in_bytes = 2 * cand * N * NF * 4 * 2        # two inputs, double-buffered
        out_bytes = cand * N * N * 4 * 2            # output, double-buffered
        w_bytes = NF * D * 2 + D * 4                # resident weight + bias
        tmp_bytes = 2 * cand * N * D * 4 + cand * N * N * 4   # e1/e2/scores
        if in_bytes + out_bytes + w_bytes + tmp_bytes <= vmem_budget_bytes:
            return cand
    return 1


def siamese_model_gen(x, w, b, *, block_b=None):
    """Forward pass of Siamese_Model_Gen (default dense-graph branch).

    x : either a stacked tensor (bs, 2, N, N, F) or a tuple/list (x1, x2)
        with each of shape (bs, N, N, F).
    w : (F, D) node-embedder projection weight.
    b : (D,)   node-embedder bias.
    Returns raw_scores of shape (bs, N, N), float32.
    """
    if isinstance(x, (tuple, list)):
        assert len(x) == 2, f"Data is not of the shape (x1,x2): len={len(x)}"
        x1, x2 = x
        assert x1.shape == x2.shape
        bs, N, N2, F = x1.shape
        assert N == N2
        stacked = None
        x1r = x1.reshape(bs, N, N * F)          # free (contiguous) reshape
        x2r = x2.reshape(bs, N, N * F)
    else:
        assert x.ndim == 5 and x.shape[1] == 2, \
            f"Data is not of the shape (x1,x2): {x.shape}"
        bs, _, N, N2, F = x.shape
        assert N == N2
        # No HBM transpose: keep the stacked layout and select the pair axis
        # inside the BlockSpec index maps.  Only a free contiguous reshape of
        # the trailing (N, F) -> N*F axes.
        stacked = x.reshape(bs, 2, N, N * F)

    D = w.shape[1]
    NF = N * F
    if block_b is None:
        block_b = _pick_block_b(bs, N, NF, D)
    assert bs % block_b == 0, (bs, block_b)

    # Fold the neighbor-sum into the projection: tile the (F, D) weight N
    # times along the contraction axis -> (N*F, D). bf16 MXU operand.
    w_tiled = jnp.tile(w, (N, 1)).astype(jnp.bfloat16)     # (N*F, D)
    b2d = b.reshape(1, D).astype(jnp.float32)

    if stacked is not None:
        x_args = (stacked, stacked)
        x_specs = [
            pl.BlockSpec((block_b, None, N, NF), lambda i: (i, 0, 0, 0)),
            pl.BlockSpec((block_b, None, N, NF), lambda i: (i, 1, 0, 0)),
        ]
    else:
        x_args = (x1r, x2r)
        x_specs = [
            pl.BlockSpec((block_b, N, NF), lambda i: (i, 0, 0)),
            pl.BlockSpec((block_b, N, NF), lambda i: (i, 0, 0)),
        ]

    out = pl.pallas_call(
        _siamese_kernel,
        out_shape=jax.ShapeDtypeStruct((bs, N, N), jnp.float32),
        grid_spec=pltpu.PrefetchScalarGridSpec(
            num_scalar_prefetch=0,
            grid=(bs // block_b,),
            in_specs=x_specs + [
                pl.BlockSpec((NF, D), lambda i: (0, 0)),   # weights resident
                pl.BlockSpec((1, D), lambda i: (0, 0)),    # bias resident
            ],
            out_specs=pl.BlockSpec((block_b, N, N), lambda i: (i, 0, 0)),
        ),
        compiler_params=pltpu.CompilerParams(
            dimension_semantics=("parallel",),
            vmem_limit_bytes=32 * 1024 * 1024,
        ),
    )(*x_args, w_tiled, b2d)
    return out


def _reference(x1, x2, w, b):
    """Pure-JAX f32 reference (exact module semantics)."""
    def embed(xx):
        agg = jnp.sum(xx, axis=2)                # sum over neighbor axis
        return jax.nn.relu(agg @ w + b)          # (bs, N, D)
    e1 = embed(x1)
    e2 = embed(x2)
    return jnp.einsum("bid,bjd->bij", e1, e2)


if __name__ == "__main__":
    key = jax.random.PRNGKey(0)
    k1, k2, kw, kb = jax.random.split(key, 4)

    bs, N, F, D = 2, 16, 4, 32
    x1 = jax.random.normal(k1, (bs, N, N, F), dtype=jnp.float32)
    x2 = jax.random.normal(k2, (bs, N, N, F), dtype=jnp.float32)

    # deterministic synthetic node_embedder parameters
    w = jax.random.normal(kw, (F, D), dtype=jnp.float32) * 0.1
    b = jax.random.normal(kb, (D,), dtype=jnp.float32) * 0.1

    # stacked-tensor path, like torch: x of shape (bs, 2, N, N, F)
    x_stacked = jnp.stack([x1, x2], axis=1)

    out = siamese_model_gen(x_stacked, w, b)
    out = jax.block_until_ready(out)

    # tuple path must give identical results (same kernel numerics)
    out_pair = jax.block_until_ready(siamese_model_gen((x1, x2), w, b))

    ref = _reference(x1, x2, w, b)
    assert out.shape == (bs, N, N), out.shape
    # bf16 MXU operands (f32 accumulation) -> loosened tolerance vs f32 ref.
    assert jnp.allclose(out, ref, rtol=5e-2, atol=1e-1), \
        float(jnp.max(jnp.abs(out - ref)))
    assert jnp.allclose(out_pair, out, rtol=0.0, atol=1e-6), \
        float(jnp.max(jnp.abs(out_pair - out)))

    print("KERNEL_OK")
</pallas_src>

<mosaic_0001>
module attributes {stable_mosaic.version = 11 : i64} {
  func.func @_siamese_kernel(%arg0: i32, %arg1: memref<2x1x16x64xf32, #tpu.memory_space<vmem>>, %arg2: memref<2x1x16x64xf32, #tpu.memory_space<vmem>>, %arg3: memref<64x32xbf16, #tpu.memory_space<vmem>>, %arg4: memref<1x32xf32, #tpu.memory_space<vmem>>, %arg5: memref<2x16x16xf32, #tpu.memory_space<vmem>>) attributes {dimension_semantics = [#tpu.dimension_semantics<parallel>], iteration_bounds = array<i64: 1>, scalar_prefetch = 0 : i64, scratch_operands = 0 : i64, tpu.core_type = #tpu.core_type<tc>, window_params = [{transform_indices = @transform_0, window_bounds = array<i64: 2, 1, 16, 64>}, {transform_indices = @transform_1, window_bounds = array<i64: 2, 1, 16, 64>}, {pipeline_mode = #tpu.pipeline_mode<synchronous>, transform_indices = @transform_2, window_bounds = array<i64: 64, 32>}, {pipeline_mode = #tpu.pipeline_mode<synchronous>, transform_indices = @transform_3, window_bounds = array<i64: 1, 32>}, {transform_indices = @transform_4, window_bounds = array<i64: 2, 16, 16>}]} {
    %c0 = arith.constant 0 : index
    %c0_0 = arith.constant 0 : index
    %c0_1 = arith.constant 0 : index
    %c0_2 = arith.constant 0 : index
    %0 = vector.load %arg1[%c0, %c0_0, %c0_1, %c0_2] : memref<2x1x16x64xf32, #tpu.memory_space<vmem>>, vector<2x1x16x64xf32>
    %1 = vector.shape_cast %0 : vector<2x1x16x64xf32> to vector<2x16x64xf32>
    %2 = arith.truncf %1 : vector<2x16x64xf32> to vector<2x16x64xbf16>
    %c0_3 = arith.constant 0 : index
    %c0_4 = arith.constant 0 : index
    %c0_5 = arith.constant 0 : index
    %c0_6 = arith.constant 0 : index
    %3 = vector.load %arg2[%c0_3, %c0_4, %c0_5, %c0_6] : memref<2x1x16x64xf32, #tpu.memory_space<vmem>>, vector<2x1x16x64xf32>
    %4 = vector.shape_cast %3 : vector<2x1x16x64xf32> to vector<2x16x64xf32>
    %5 = arith.truncf %4 : vector<2x16x64xf32> to vector<2x16x64xbf16>
    %c0_7 = arith.constant 0 : index
    %c0_8 = arith.constant 0 : index
    %6 = vector.load %arg3[%c0_7, %c0_8] : memref<64x32xbf16, #tpu.memory_space<vmem>>, vector<64x32xbf16>
    %c0_9 = arith.constant 0 : index
    %c0_10 = arith.constant 0 : index
    %7 = vector.load %arg4[%c0_9, %c0_10] : memref<1x32xf32, #tpu.memory_space<vmem>>, vector<1x32xf32>
    %cst = arith.constant dense<0.000000e+00> : vector<2x16x32xf32>
    %8 = tpu.matmul %2, %6, %cst {dimension_numbers = #tpu.dot_dimension_numbers<[2], [0], [0, 1], [1], [0, 0, 0, 1, 1, 1], [], []>} : vector<2x16x64xbf16>, vector<64x32xbf16>, vector<2x16x32xf32> -> vector<2x16x32xf32>
    %cst_11 = arith.constant dense<0.000000e+00> : vector<2x16x32xf32>
    %9 = tpu.matmul %5, %6, %cst_11 {dimension_numbers = #tpu.dot_dimension_numbers<[2], [0], [0, 1], [1], [0, 0, 0, 1, 1, 1], [], []>} : vector<2x16x64xbf16>, vector<64x32xbf16>, vector<2x16x32xf32> -> vector<2x16x32xf32>
    %10 = vector.shape_cast %7 : vector<1x32xf32> to vector<1x1x32xf32>
    %11 = vector.broadcast %10 : vector<1x1x32xf32> to vector<2x16x32xf32>
    %12 = arith.addf %8, %11 : vector<2x16x32xf32>
    %cst_12 = arith.constant 0.000000e+00 : f32
    %13 = vector.broadcast %cst_12 : f32 to vector<2x16x32xf32>
    %14 = arith.maximumf %12, %13 : vector<2x16x32xf32>
    %15 = vector.shape_cast %7 : vector<1x32xf32> to vector<1x1x32xf32>
    %16 = vector.broadcast %15 : vector<1x1x32xf32> to vector<2x16x32xf32>
    %17 = arith.addf %9, %16 : vector<2x16x32xf32>
    %cst_13 = arith.constant 0.000000e+00 : f32
    %18 = vector.broadcast %cst_13 : f32 to vector<2x16x32xf32>
    %19 = arith.maximumf %17, %18 : vector<2x16x32xf32>
    %20 = arith.truncf %14 : vector<2x16x32xf32> to vector<2x16x32xbf16>
    %21 = arith.truncf %19 : vector<2x16x32xf32> to vector<2x16x32xbf16>
    %cst_14 = arith.constant dense<0.000000e+00> : vector<2x16x16xf32>
    %22 = tpu.matmul %20, %21, %cst_14 {dimension_numbers = #tpu.dot_dimension_numbers<[2], [2], [1], [1], [0, 0, 0, 1, 1, 1], [0], [0]>} : vector<2x16x32xbf16>, vector<2x16x32xbf16>, vector<2x16x16xf32> -> vector<2x16x16xf32>
    %c0_15 = arith.constant 0 : index
    %c0_16 = arith.constant 0 : index
    %c0_17 = arith.constant 0 : index
    %23 = vector.load %arg5[%c0_15, %c0_16, %c0_17] : memref<2x16x16xf32, #tpu.memory_space<vmem>>, vector<2x16x16xf32>
    tpu.vector_store %arg5[%c0_15, %c0_16, %c0_17], %22 {strides = array<i32>} : memref<2x16x16xf32, #tpu.memory_space<vmem>>, vector<2x16x16xf32>,
    return
  }
  func.func @transform_0(%arg0: i32) -> (i32, i32, i32, i32) {
    %c0_i32 = arith.constant 0 : i32
    %c0_i32_0 = arith.constant 0 : i32
    %c0_i32_1 = arith.constant 0 : i32
    %c0_i32_2 = arith.constant 0 : i32
    return %arg0, %c0_i32, %c0_i32_0, %c0_i32_1 : i32, i32, i32, i32
  }
  func.func @transform_1(%arg0: i32) -> (i32, i32, i32, i32) {
    %c1_i32 = arith.constant 1 : i32
    %c0_i32 = arith.constant 0 : i32
    %c0_i32_0 = arith.constant 0 : i32
    %c0_i32_1 = arith.constant 0 : i32
    return %arg0, %c1_i32, %c0_i32, %c0_i32_0 : i32, i32, i32, i32
  }
  func.func @transform_2(%arg0: i32) -> (i32, i32) {
    %c0_i32 = arith.constant 0 : i32
    %c0_i32_0 = arith.constant 0 : i32
    %c0_i32_1 = arith.constant 0 : i32
    return %c0_i32, %c0_i32_0 : i32, i32
  }
  func.func @transform_3(%arg0: i32) -> (i32, i32) {
    %c0_i32 = arith.constant 0 : i32
    %c0_i32_0 = arith.constant 0 : i32
    %c0_i32_1 = arith.constant 0 : i32
    return %c0_i32, %c0_i32_0 : i32, i32
  }
  func.func @transform_4(%arg0: i32) -> (i32, i32, i32) {
    %c0_i32 = arith.constant 0 : i32
    %c0_i32_0 = arith.constant 0 : i32
    %c0_i32_1 = arith.constant 0 : i32
    return %arg0, %c0_i32, %c0_i32_0 : i32, i32, i32
  }
}

</mosaic_0001>

<bundles_post_ra>
// kernel: tpu_custom_call.1
= control target key start
LH: loop header
LB: loop body
LE: loop exit
PB: predicated region body
PF: predicated region fallthrough
CT: control target
= control target key end

     0   :  { %9 = vsyncpa [#allocation3], 0  ;;  %s586_s0 = inlined_call_operand.hbm [shape: f32[2,2,16,64], index: 0, kind: input, shape index: {}]   ;;  %s587_s1 = inlined_call_operand.hbm [shape: f32[2,2,16,64], index: 1, kind: input, shape index: {}]   ;;  %s588_s2 = inlined_call_operand.vmem [shape: bf16[64,32], index: 2, kind: input, shape index: {}]   ;;  %s589_s3 = inlined_call_operand.vmem [shape: f32[1,32], index: 3, kind: input, shape index: {}]   ;;  %s590_s4 = inlined_call_operand.hbm [shape: f32[2,16,16], index: 4, kind: output, shape index: {}]  }
   0x1   :  { %10 = vsyncpa [#allocation6], 0 }
   0x2   :  { %11 = vsyncpa [#allocation4], 0 }
   0x3   :  { %s21_s15 = sld [smem:[#allocation0]]   ;;  %s508_s16 = smov [#allocation2]  }
   0x4   :  { %s29_s17 = sshll.u32 %s508_s16, 4  ;;  %s509_s18 = smov 512   ;;  %s30_s17 = int_to_ptr.vmem [resolvable:$true] %s29_s17 }
   0x5   :  { %36 = sst [smem:[#allocation9]] %s509_s18  ;;  %s510_s19 = smov 256  }
   0x6   :  { %38 = sst [smem:[#allocation9 + $0x1]] %s510_s19  ;;  %s511_s20 = smov 2  }
   0x7   :  { %40 = sst [smem:[#allocation9 + $0x2]] %s511_s20  ;;  %s512_s22 = smov 128  }
   0x8   :  { %42 = sst [smem:[#allocation9 + $0x3]] %s512_s22  ;;  %s513_s24 = smov 8  }
   0x9   :  { %s390_s21 = sshll.u32 %s21_s15, 26  ;;  %44 = sst [smem:[#allocation9 + $0x4]] %s512_s22 }
   0xa   :  { %s391_s23 = sadd.s32 134217728, %s390_s21  ;;  %46 = sst [smem:[#allocation9 + $0x5]] %s513_s24 }
   0xb   :  { %s514_s25 = smov [#allocation3]   ;;  %s515_s26 = smov 131072  }
   0xc   :  { %48 = dma.general %s586_s0, 512, %s30_s17, %s514_s25, %s515_s26, [#allocation9], %s391_s23, 0  }
   0xd   :  { %s54_s5 = scalar_lea.hbm %s587_s1, 256  ;;  %s59_s6 = sld [smem:[#allocation0]]  }
   0xe   :  { %s516_s7 = smov [#allocation5]   ;;  %s517_s9 = smov 512  }
   0xf   :  { %s67_s8 = sshll.u32 %s516_s7, 4  ;;  %74 = sst [smem:[#allocation11]] %s517_s9  ;;  %s68_s8 = int_to_ptr.vmem [resolvable:$true] %s67_s8 }
  0x10   :  { %s518_s10 = smov 256   ;;  %s519_s11 = smov 2  }
  0x11   :  { %76 = sst [smem:[#allocation11 + $0x1]] %s518_s10  ;;  %s520_s13 = smov 128  }
  0x12   :  { %78 = sst [smem:[#allocation11 + $0x2]] %s519_s11  ;;  %s521_s0 = smov 8  }
  0x13   :  { %s392_s12 = sshll.u32 %s59_s6, 26  ;;  %80 = sst [smem:[#allocation11 + $0x3]] %s520_s13 }
  0x14   :  { %s393_s14 = sadd.s32 134217728, %s392_s12  ;;  %82 = sst [smem:[#allocation11 + $0x4]] %s520_s13 }
  0x15   :  { %84 = sst [smem:[#allocation11 + $0x5]] %s521_s0  ;;  %s522_s15 = smov [#allocation6]  }
  0x16   :  { %s523_s16 = smov 131072  }
  0x17   :  { %86 = dma.general %s54_s5, 512, %s68_s8, %s522_s15, %s523_s16, [#allocation11], %s393_s14, 0  }
  0x18   :  { %502 = dma.done.wait [#allocation3], 512  }
  0x19   :  { %503 = vsyncadd [#allocation3], 4294966784 }
  0x1a   :  { %504 = dma.done.wait [#allocation6], 512  }
  0x1b   :  { %505 = vsyncadd [#allocation6], 4294966784  ;;  %v478_v0 = vld [vmem:[%s588_s2 + $0x18] sm:$0xff]   ;;  %v479_v1 = vld [vmem:[%s588_s2 + $0x10] sm:$0xff]   ;;  %vm149_vm0 = vcmask 523264   ;;  %v524_v16 = vmov 0.0  }
  0x1c   :  { %433 = vmatprep.subr.bf16.mxu1 %v478_v0  ;;  %421 = vmatprep.subr.bf16.mxu0 %v478_v0  ;;  %v480_v2 = vld [vmem:[%s588_s2 + $0x8] sm:$0xff]   ;;  %v104_v3 = vld [vmem:[#allocation5] sm:$0xff]  ;;  %v106_v10 = vld [vmem:[#allocation5 + $0x10] sm:$0xff]  ;;  %vm525_vm1 = vmmov 0   ;;  %vm272_vm2 = vcmask 261120   ;;  %vm367_vm3 = vcmask 130048  }
  0x1d   :  { %434 = vmatpush3.bf16.msra.mxu1 %v478_v0  ;;  %422 = vmatpush3.bf16.msra.mxu0 %v478_v0  ;;  %v105_v4 = vld [vmem:[#allocation5 + $0x8] sm:$0xff]  ;;  %v98_v6 = vld [vmem:[#allocation2] sm:$0xff]  ;;  %v107_v11 = vld [vmem:[#allocation5 + $0x18] sm:$0xff] }
  0x1e   :  { %435 = vmatprep.subr.bf16.mxu1 %v479_v1  ;;  %423 = vmatprep.subr.bf16.mxu0 %v479_v1  ;;  %v108_v5 = vpack.c.bf16 %v105_v4, %v104_v3  ;;  %v99_v7 = vld [vmem:[#allocation2 + $0x8] sm:$0xff]  ;;  %v481_v9 = vld [vmem:[%s588_s2] sm:$0xff]   ;;  %v100_v12 = vld [vmem:[#allocation2 + $0x10] sm:$0xff]  ;;  %v109_v14 = vpack.c.bf16 %v107_v11, %v106_v10 }
  0x1f   :  { %v102_v8 = vpack.c.bf16 %v99_v7, %v98_v6  ;;  %v101_v13 = vld [vmem:[#allocation2 + $0x18] sm:$0xff]  ;;  %v394_v17 = vld [vmem:[%s589_s3] ss:$0 sm:$0xff]  ;;  %s526_s3 = smov [#allocation7]  }
  0x20   :  { %441 = vmatprep.mubr.msk.bf16.mxu1 %vm149_vm0, %v108_v5  ;;  %v103_v15 = vpack.c.bf16 %v101_v13, %v100_v12  ;;  %s377_s25 = sshll.u32 %s526_s3, 4  ;;  %s378_s25 = int_to_ptr.vmem [resolvable:$true] %s377_s25 }
  0x21   :  { %436 = vmatpush3.bf16.msra.mxu1 %v479_v1  ;;  %424 = vmatpush3.bf16.msra.mxu0 %v479_v1  ;;  %s482_s26 = scalar_lea.vmem %s378_s25, 512  ;;  %p487_p1 = scmp.lt.s32.totalorder %s378_s25, %s378_s25 }
  0x22   :  { %437 = vmatprep.subr.bf16.mxu1 %v480_v2  ;;  %425 = vmatprep.subr.bf16.mxu0 %v480_v2  ;;  %p483_p0 = scmp.ne.s32.totalorder %s378_s25, %s482_s26  ;;  %p488_p2 = scmp.lt.s32.totalorder %s482_s26, %s482_s26 }
  0x23   :  { %429 = vmatprep.mubr.msk.bf16.mxu0 %vm149_vm0, %v102_v8 }
  0x24   :  { %p489_p3 = por %p488_p2, %p487_p1 }
  0x25   :  { %438 = vmatpush3.bf16.msra.mxu1 %v480_v2  ;;  %426 = vmatpush3.bf16.msra.mxu0 %v480_v2 }
  0x26   :  { %439 = vmatprep.subr.bf16.mxu1 %v481_v9  ;;  %427 = vmatprep.subr.bf16.mxu0 %v481_v9  ;;  %p490_p4 = pnand %p489_p3, %p483_p0 }
  0x29   :  { %440 = vmatpush3.bf16.msra.mxu1 %v481_v9  ;;  %428 = vmatpush3.bf16.msra.mxu0 %v481_v9 }
  0x2a   :  { %451 = vmatprep.subr.bf16.mxu1 %v524_v16  ;;  %445 = vmatprep.subr.bf16.mxu0 %v524_v16 }
  0x2c   :  { %442 = vmatmul.mubr.msk.bf16.vlgmr.msra.gmra.mxu1 %vm149_vm0, %v109_v14  ;;  %430 = vmatmul.mubr.msk.bf16.vlgmr.msra.gmra.mxu0 %vm149_vm0, %v103_v15 }
  0x2d   :  { %453 = vmatprep.mubr.msk.bf16.mxu1 %vm525_vm1, %v524_v16  ;;  %447 = vmatprep.mubr.msk.bf16.mxu0 %vm525_vm1, %v524_v16 }
  0xec   :  { %v443_v18 = vpop.f32.mrf.mxu1  ;;  %v431_v19 = vpop.f32.mrf.mxu0 }
  0xed   :  { %v258_v22 = vadd.f32 %v443_v18, %v394_v17  ;;  %v199_v31 = vadd.f32 %v431_v19, %v394_v17 }
  0xee   :  { %v249_v20 = vpop.f32.mrf.mxu1  ;;  %v190_v21 = vpop.f32.mrf.mxu0 }
  0xef   :  { %v250_v25 = vadd.f32 %v394_v17, %v249_v20  ;;  %v266_v28 = vmax.f32 %v258_v22, 0.0  ;;  %v191_v37 = vadd.f32 %v394_v17, %v190_v21  ;;  %v207_v41 = vmax.f32 %v199_v31, 0.0 }
  0xf0   :  { %v444_v23 = vpop.f32.mrf.mxu1  ;;  %v432_v24 = vpop.f32.mrf.mxu0 }
  0xf1   :  { %v261_v26 = vadd.f32 %v444_v23, %v394_v17  ;;  %v264_v33 = vmax.f32 %v250_v25, 0.0  ;;  %v202_v36 = vadd.f32 %v432_v24, %v394_v17  ;;  %v205_v44 = vmax.f32 %v191_v37, 0.0 }
  0xf2   :  { %v252_v27 = vpop.f32.mrf.mxu1  ;;  %v193_v32 = vpop.f32.mrf.mxu0 }
  0xf3   :  { %v267_v29 = vmax.f32 %v261_v26, 0.0  ;;  %v253_v30 = vadd.f32 %v394_v17, %v252_v27  ;;  %v194_v39 = vadd.f32 %v394_v17, %v193_v32  ;;  %v208_v42 = vmax.f32 %v202_v36, 0.0 }
  0xf5   :  { %v271_v34 = vpack.c.bf16 %v267_v29, %v266_v28  ;;  %v265_v35 = vmax.f32 %v253_v30, 0.0  ;;  %v206_v45 = vmax.f32 %v194_v39, 0.0  ;;  %v269_v46 = vpack.c.bf16 %v208_v42, %v207_v41 }
  0xf7   :  { %v270_v38 = vpack.c.bf16 %v265_v35, %v264_v33  ;;  %v324_v40 = vsel %vm272_vm2, %v271_v34, 0  ;;  %v268_v47 = vpack.c.bf16 %v206_v45, %v205_v44 }
  0xf8   :  { %452 = vmatpush3.bf16.xpose.msra.mxu1 %v324_v40 }
  0xf9   :  { %v277_v43 = vsel %vm272_vm2, %v270_v38, 0 }
  0xfa   :  { %446 = vmatpush3.bf16.xpose.msra.mxu0 %v277_v43 }
  0xff   :  { %454 = vmatmul.mubr.msk.bf16.vlgmr.msra.gmra.mxu1 %vm272_vm2, %v269_v46 }
 0x101   :  { %448 = vmatmul.mubr.msk.bf16.vlgmr.msra.gmra.mxu0 %vm272_vm2, %v268_v47 }
 0x1bf   :  { %v360_v48 = vpop.f32.mrf.mxu1 }
 0x1c0   :  { %370 = vst.msk [vmem:[#allocation7 + $0x10] sm:$0xff] %vm367_vm3, %v360_v48 }
 0x1c1   :  { %v313_v49 = vpop.f32.mrf.mxu0  ;;  %v455_v50 = vpop.f32.mrf.mxu1 }
 0x1c2   :  { %368 = vst.msk [vmem:[#allocation7] sm:$0xff] %vm367_vm3, %v313_v49 }
 0x1c3   :  { %v449_v51 = vpop.f32.mrf.mxu0  ;;  %v363_v52 = vpop.f32.mrf.mxu1 }
 0x1c4   :  { %371 = vst.msk [vmem:[#allocation7 + $0x18] sm:$0xff] %vm367_vm3, %v363_v52 }
 0x1c5   :  { %v316_v53 = vpop.f32.mrf.mxu0  ;;  %v456_v54 = vpop.f32.mrf.mxu1 }
 0x1c6   :  { %369 = vst.msk [vmem:[#allocation7 + $0x8] sm:$0xff] %vm367_vm3, %v316_v53 }
 0x1c7   :  { %v450_v55 = vpop.f32.mrf.mxu0 }
 0x1c8   :  { %493 = shalt.err (!%p490_p4)
}
 0x1c9   :  { %s527_s27 = smov 128   ;;  %s528_s28 = smov 8  }
 0x1ca   :  { %383 = dma.vmem_to_hbm [thread:$0]  %s378_s25, 512, %s590_s4, [#allocation4], %s527_s27, %s527_s27, %s528_s28  }
 0x1cb   :  { %506 = dma.done.wait [#allocation4], 512  }
 0x1cc   :  { %507 = vsyncadd [#allocation4], 4294966784 }
 0x1cd   :  { %387 = vsyncpa [#allocation3], 1 }
 0x1ce   :  { %388 = vsyncpa [#allocation6], 1 }
 0x1cf   :  { %389 = vsyncpa [#allocation4], 1 }

</bundles_post_ra>
